<compile_context>
chip_gen: v6e
topology: v6e:2x2x1
jax: 0.10.0
libtpu: 0.0.40
codegen_flags: <defaults>
</compile_context>

<pallas_src>
import jax
import jax.numpy as jnp
from jax import lax
from jax.experimental import pallas as pl
from jax.experimental.pallas import tpu as pltpu


def _listener_kernel(emb_ref, alive_ref, wih_ref, whh_ref, bih_ref, bhh_ref,
                     wo_ref, bo_ref,
                     probs_ref, state_ref, logits_ref,
                     gi_sc):
    """Whole Listener forward in one invocation.

    emb_ref:   (T*Bp, E)  time-major embeddings (row = t*Bp + b), batch padded to Bp
    alive_ref: (T*Bp, 1)  1.0 while a sequence is still alive at step t, else 0.0
    gi_sc:     (T*Bp, 3E) scratch holding the hoisted input projection
    """
    Bp, E = state_ref.shape
    T = emb_ref.shape[0] // Bp

    # Prologue: input projection for ALL timesteps at once (one big MXU matmul,
    # removes W_ih from the serial recurrence entirely).
    gi_sc[...] = (
        jnp.dot(emb_ref[...], wih_ref[...], preferred_element_type=jnp.float32)
        + bih_ref[...]
    )

    def step(t, h):
        row = pl.multiple_of(t * Bp, 8)
        gi = gi_sc[pl.ds(row, Bp), :]          # (Bp, 3E): precomputed x_t @ W_ih + b_ih
        alive = alive_ref[pl.ds(row, Bp), :]   # (Bp, 1):  freeze mask for step t

        # PyTorch GRUCell, gate order (r, z, n).
        gh = jnp.dot(h, whh_ref[...], preferred_element_type=jnp.float32) + bhh_ref[...]
        r = jax.nn.sigmoid(gi[:, 0 * E:1 * E] + gh[:, 0 * E:1 * E])
        z = jax.nn.sigmoid(gi[:, 1 * E:2 * E] + gh[:, 1 * E:2 * E])
        n = jnp.tanh(gi[:, 2 * E:3 * E] + r * gh[:, 2 * E:3 * E])
        h_new = (1.0 - z) * n + z * h

        # Alive sieve: alive rows take the new state, dead rows stay frozen.
        return jnp.where(alive > 0.5, h_new, h)

    h0 = jnp.zeros((Bp, E), jnp.float32)
    h = lax.fori_loop(0, T, step, h0, unroll=True)

    # Finalize: Linear -> softmax (logits also emitted for unbiased sampling in the wrapper).
    logits = jnp.dot(h, wo_ref[...], preferred_element_type=jnp.float32) + bo_ref[...]
    m = jnp.max(logits, axis=-1, keepdims=True)
    e = jnp.exp(logits - m)
    probs = e * pl.reciprocal(jnp.sum(e, axis=-1, keepdims=True), approx=False)

    probs_ref[...] = probs
    state_ref[...] = h
    logits_ref[...] = logits


def listener_pallas(emb_2d, alive_2d, w_ih, w_hh, b_ih, b_hh, w_out, b_out, *, b_pad):
    TBp, E = emb_2d.shape
    A = w_out.shape[1]

    def vmem():
        return pl.BlockSpec(memory_space=pltpu.MemorySpace.VMEM)

    return pl.pallas_call(
        _listener_kernel,
        out_shape=(
            jax.ShapeDtypeStruct((b_pad, A), jnp.float32),   # action_probs (padded batch)
            jax.ShapeDtypeStruct((b_pad, E), jnp.float32),   # final GRU state
            jax.ShapeDtypeStruct((b_pad, A), jnp.float32),   # action logits (for sampling)
        ),
        in_specs=[vmem() for _ in range(8)],
        out_specs=(vmem(), vmem(), vmem()),
        scratch_shapes=[pltpu.VMEM((TBp, 3 * E), jnp.float32)],
        compiler_params=pltpu.CompilerParams(
            # No grid => weights are single-buffered VMEM residents. Raise this if E grows
            # (W_ih / W_hh are E x 3E each); 32 MiB is safe on v5e/v6e/v7x.
            vmem_limit_bytes=32 * 1024 * 1024,
        ),
    )(emb_2d, alive_2d, w_ih, w_hh, b_ih, b_hh, w_out, b_out)


def init_listener_params(key, embedding_size, vocab_size, num_actions):
    """Deterministic synthetic parameters matching Listener.__init__ shapes."""
    k = jax.random.split(key, 7)
    E, V, A = embedding_size, vocab_size, num_actions
    scale = 1.0 / jnp.sqrt(jnp.float32(E))
    return dict(
        emb=jax.random.normal(k[0], (V, E), jnp.float32),                    # nn.Embedding(V, E)
        w_ih=(jax.random.normal(k[1], (E, 3 * E), jnp.float32) * scale),     # GRUCell weight_ih^T
        w_hh=(jax.random.normal(k[2], (E, 3 * E), jnp.float32) * scale),     # GRUCell weight_hh^T
        b_ih=(jax.random.normal(k[3], (1, 3 * E), jnp.float32) * scale),
        b_hh=(jax.random.normal(k[4], (1, 3 * E), jnp.float32) * scale),
        w_out=(jax.random.normal(k[5], (E, A), jnp.float32) * scale),        # nn.Linear(E, A) weight^T
        b_out=(jax.random.normal(k[6], (1, A), jnp.float32) * scale),
    )


def _exclusive_alive_mask(utterance):
    """alive[b, t] = 1. iff every token before position t is nonzero.

    (Token t itself is still processed when alive[b, t] == 1, matching the PyTorch sieve which
    marks dead AFTER processing the terminating 0.)
    """
    B, _ = utterance.shape
    nz = (utterance != 0).astype(jnp.float32)
    return jnp.concatenate(
        [jnp.ones((B, 1), jnp.float32), jnp.cumprod(nz[:, :-1], axis=1)], axis=1)


@jax.jit
def listener_forward(utterance, global_idxes, params, sample_key):
    """utterance: (B, T) int32 token ids; returns (action_probs, final_state, actions, global_idxes)."""
    B, T = utterance.shape
    E = params["emb"].shape[1]

    if T == 0:  # degenerate case: no tokens processed, state stays zero (kernel never needed)
        state = jnp.zeros((B, E), jnp.float32)
        logits = state @ params["w_out"] + params["b_out"]
        probs = jax.nn.softmax(logits, axis=-1)
        actions = jax.random.categorical(sample_key, logits, axis=-1)
        return probs, state, actions, global_idxes

    # Pad batch to a sublane multiple so every in-kernel row slice is (8, lane)-aligned.
    b_pad = ((B + 7) // 8) * 8
    pad = b_pad - B

    # Glue outside the kernel: embedding gather + time-major layout + freeze-mask precompute.
    emb = jnp.take(params["emb"], utterance, axis=0)                         # (B, T, E)
    emb_2d = jnp.pad(jnp.transpose(emb, (1, 0, 2)),
                     ((0, 0), (0, pad), (0, 0))).reshape(T * b_pad, E)       # (T*Bp, E)
    alive_2d = jnp.pad(jnp.transpose(_exclusive_alive_mask(utterance), (1, 0)),
                       ((0, 0), (0, pad))).reshape(T * b_pad, 1)             # (T*Bp, 1)

    probs_p, state_p, logits_p = listener_pallas(
        emb_2d, alive_2d,
        params["w_ih"], params["w_hh"], params["b_ih"], params["b_hh"],
        params["w_out"], params["b_out"], b_pad=b_pad)

    probs, state, logits = probs_p[:B], state_p[:B], logits_p[:B]

    # TODO(synk): rl_common.draw_categorical_sample returns a stochastic-sample object
    # (actions + log_prob + entropy keyed by batch_idxes); here we sample actions from the
    # kernel's logits (equivalent to sampling from softmax probs) with a fixed PRNG key.
    actions = jax.random.categorical(sample_key, logits, axis=-1)
    return probs, state, actions, global_idxes


def _listener_ref(utterance, params):
    """Pure-JAX reference mirroring the PyTorch loop (AliveSieve emulated as a freeze mask)."""
    B, T = utterance.shape
    E = params["emb"].shape[1]
    emb = jnp.take(params["emb"], utterance, axis=0)
    h = jnp.zeros((B, E), jnp.float32)
    alive = jnp.ones((B, 1), jnp.float32)
    for t in range(T):
        gi = emb[:, t] @ params["w_ih"] + params["b_ih"]
        gh = h @ params["w_hh"] + params["b_hh"]
        r = jax.nn.sigmoid(gi[:, :E] + gh[:, :E])
        z = jax.nn.sigmoid(gi[:, E:2 * E] + gh[:, E:2 * E])
        n = jnp.tanh(gi[:, 2 * E:] + r * gh[:, 2 * E:])
        h = alive * ((1.0 - z) * n + z * h) + (1.0 - alive) * h
        alive = alive * (utterance[:, t:t + 1] != 0).astype(jnp.float32)
    logits = h @ params["w_out"] + params["b_out"]
    return jax.nn.softmax(logits, axis=-1), h


if __name__ == "__main__":
    EMBEDDING_SIZE = 32
    VOCAB_SIZE = 10
    NUM_ACTIONS = 4
    BATCH = 2
    SEQ = 8

    root = jax.random.PRNGKey(0)
    k_params, k_utt, k_sample = jax.random.split(root, 3)

    params = init_listener_params(k_params, EMBEDDING_SIZE, VOCAB_SIZE, NUM_ACTIONS)

    # Token ids in [0, VOCAB); 0 is the terminator the sieve watches for.
    utterance = jax.random.randint(k_utt, (BATCH, SEQ), 0, VOCAB_SIZE, dtype=jnp.int32)
    global_idxes = jnp.arange(BATCH, dtype=jnp.int32)

    probs, state, actions, gidx = listener_forward(utterance, global_idxes, params, k_sample)
    jax.block_until_ready((probs, state, actions, gidx))

    assert probs.shape == (BATCH, NUM_ACTIONS)
    assert state.shape == (BATCH, EMBEDDING_SIZE)
    assert actions.shape == (BATCH,)
    # Sanity: softmax rows sum to 1.
    assert bool(jnp.all(jnp.abs(jnp.sum(probs, axis=-1) - 1.0) < 1e-4))

    # Cross-check the Pallas recurrence against a pure-JAX reference of the PyTorch loop.
    ref_probs, ref_state = _listener_ref(utterance, params)
    assert bool(jnp.allclose(probs, ref_probs, atol=1e-2, rtol=1e-2))
    assert bool(jnp.allclose(state, ref_state, atol=1e-2, rtol=1e-2))

    print("KERNEL_OK")
</pallas_src>

<mosaic_0001>
module attributes {stable_mosaic.version = 11 : i64} {
  func.func @_listener_kernel(%arg0: memref<64x32xf32, #tpu.memory_space<vmem>>, %arg1: memref<64x1xf32, #tpu.memory_space<vmem>>, %arg2: memref<32x96xf32, #tpu.memory_space<vmem>>, %arg3: memref<32x96xf32, #tpu.memory_space<vmem>>, %arg4: memref<1x96xf32, #tpu.memory_space<vmem>>, %arg5: memref<1x96xf32, #tpu.memory_space<vmem>>, %arg6: memref<32x4xf32, #tpu.memory_space<vmem>>, %arg7: memref<1x4xf32, #tpu.memory_space<vmem>>, %arg8: memref<8x4xf32, #tpu.memory_space<vmem>>, %arg9: memref<8x32xf32, #tpu.memory_space<vmem>>, %arg10: memref<8x4xf32, #tpu.memory_space<vmem>>, %arg11: memref<64x96xf32, #tpu.memory_space<vmem>>) attributes {dimension_semantics = [], scalar_prefetch = 0 : i64, scratch_operands = 1 : i64, tpu.core_type = #tpu.core_type<tc>} {
    %c0 = arith.constant 0 : index
    %c0_0 = arith.constant 0 : index
    %0 = vector.load %arg0[%c0, %c0_0] : memref<64x32xf32, #tpu.memory_space<vmem>>, vector<64x32xf32>
    %c0_1 = arith.constant 0 : index
    %c0_2 = arith.constant 0 : index
    %1 = vector.load %arg2[%c0_1, %c0_2] : memref<32x96xf32, #tpu.memory_space<vmem>>, vector<32x96xf32>
    %cst = arith.constant dense<0.000000e+00> : vector<64x96xf32>
    %2 = tpu.matmul %0, %1, %cst {dimension_numbers = #tpu.dot_dimension_numbers<[1], [0], [0], [1], [0, 0, 1, 1], [], []>} : vector<64x32xf32>, vector<32x96xf32>, vector<64x96xf32> -> vector<64x96xf32>
    %c0_3 = arith.constant 0 : index
    %c0_4 = arith.constant 0 : index
    %3 = vector.load %arg4[%c0_3, %c0_4] : memref<1x96xf32, #tpu.memory_space<vmem>>, vector<1x96xf32>
    %4 = vector.broadcast %3 : vector<1x96xf32> to vector<64x96xf32>
    %5 = arith.addf %2, %4 : vector<64x96xf32>
    %c0_5 = arith.constant 0 : index
    %c0_6 = arith.constant 0 : index
    %6 = vector.load %arg11[%c0_5, %c0_6] : memref<64x96xf32, #tpu.memory_space<vmem>>, vector<64x96xf32>
    tpu.vector_store %arg11[%c0_5, %c0_6], %5 {strides = array<i32>} : memref<64x96xf32, #tpu.memory_space<vmem>>, vector<64x96xf32>,
    %cst_7 = arith.constant 0.000000e+00 : f32
    %7 = vector.broadcast %cst_7 : f32 to vector<8x32xf32>
    %c0_i32 = arith.constant 0 : i32
    %c8_i32 = arith.constant 8 : i32
    %8 = arith.muli %c0_i32, %c8_i32 : i32
    %9 = tpu.assume_multiple %8, 8 : i32
    %10 = arith.index_cast %9 : i32 to index
    %c0_8 = arith.constant 0 : index
    %11 = vector.load %arg11[%10, %c0_8] : memref<64x96xf32, #tpu.memory_space<vmem>>, vector<8x96xf32>
    %12 = arith.index_cast %9 : i32 to index
    %c0_9 = arith.constant 0 : index
    %13 = vector.load %arg1[%12, %c0_9] : memref<64x1xf32, #tpu.memory_space<vmem>>, vector<8x1xf32>
    %c0_10 = arith.constant 0 : index
    %c0_11 = arith.constant 0 : index
    %14 = vector.load %arg3[%c0_10, %c0_11] : memref<32x96xf32, #tpu.memory_space<vmem>>, vector<32x96xf32>
    %cst_12 = arith.constant dense<0.000000e+00> : vector<8x96xf32>
    %15 = tpu.matmul %7, %14, %cst_12 {dimension_numbers = #tpu.dot_dimension_numbers<[1], [0], [0], [1], [0, 0, 1, 1], [], []>} : vector<8x32xf32>, vector<32x96xf32>, vector<8x96xf32> -> vector<8x96xf32>
    %c0_13 = arith.constant 0 : index
    %c0_14 = arith.constant 0 : index
    %16 = vector.load %arg5[%c0_13, %c0_14] : memref<1x96xf32, #tpu.memory_space<vmem>>, vector<1x96xf32>
    %17 = vector.broadcast %16 : vector<1x96xf32> to vector<8x96xf32>
    %18 = arith.addf %15, %17 : vector<8x96xf32>
    %19 = vector.extract_strided_slice %11 {offsets = [0, 0], sizes = [8, 32], strides = [1, 1]} : vector<8x96xf32> to vector<8x32xf32>
    %20 = vector.extract_strided_slice %18 {offsets = [0, 0], sizes = [8, 32], strides = [1, 1]} : vector<8x96xf32> to vector<8x32xf32>
    %21 = arith.addf %19, %20 : vector<8x32xf32>
    %22 = arith.negf %21 : vector<8x32xf32>
    %23 = math.exp %22 : vector<8x32xf32>
    %cst_15 = arith.constant 1.000000e+00 : f32
    %24 = vector.broadcast %cst_15 : f32 to vector<8x32xf32>
    %25 = arith.addf %24, %23 : vector<8x32xf32>
    %26 = arith.divf %24, %25 : vector<8x32xf32>
    %27 = vector.extract_strided_slice %11 {offsets = [0, 32], sizes = [8, 32], strides = [1, 1]} : vector<8x96xf32> to vector<8x32xf32>
    %28 = vector.extract_strided_slice %18 {offsets = [0, 32], sizes = [8, 32], strides = [1, 1]} : vector<8x96xf32> to vector<8x32xf32>
    %29 = arith.addf %27, %28 : vector<8x32xf32>
    %30 = arith.negf %29 : vector<8x32xf32>
    %31 = math.exp %30 : vector<8x32xf32>
    %cst_16 = arith.constant 1.000000e+00 : f32
    %32 = vector.broadcast %cst_16 : f32 to vector<8x32xf32>
    %33 = arith.addf %32, %31 : vector<8x32xf32>
    %34 = arith.divf %32, %33 : vector<8x32xf32>
    %35 = vector.extract_strided_slice %11 {offsets = [0, 64], sizes = [8, 32], strides = [1, 1]} : vector<8x96xf32> to vector<8x32xf32>
    %36 = vector.extract_strided_slice %18 {offsets = [0, 64], sizes = [8, 32], strides = [1, 1]} : vector<8x96xf32> to vector<8x32xf32>
    %37 = arith.mulf %26, %36 : vector<8x32xf32>
    %38 = arith.addf %35, %37 : vector<8x32xf32>
    %39 = math.tanh %38 : vector<8x32xf32>
    %cst_17 = arith.constant 1.000000e+00 : f32
    %40 = vector.broadcast %cst_17 : f32 to vector<8x32xf32>
    %41 = arith.subf %40, %34 : vector<8x32xf32>
    %42 = arith.mulf %41, %39 : vector<8x32xf32>
    %43 = arith.mulf %34, %7 : vector<8x32xf32>
    %44 = arith.addf %42, %43 : vector<8x32xf32>
    %cst_18 = arith.constant 5.000000e-01 : f32
    %45 = vector.broadcast %cst_18 : f32 to vector<8x1xf32>
    %46 = arith.cmpf ogt, %13, %45 : vector<8x1xf32>
    %47 = vector.shape_cast %46 : vector<8x1xi1> to vector<8x1xi1>
    %48 = vector.broadcast %47 : vector<8x1xi1> to vector<8x32xi1>
    %49 = arith.select %48, %44, %7 : vector<8x32xi1>, vector<8x32xf32>
    %c1_i32 = arith.constant 1 : i32
    %c8_i32_19 = arith.constant 8 : i32
    %50 = arith.muli %c1_i32, %c8_i32_19 : i32
    %51 = tpu.assume_multiple %50, 8 : i32
    %52 = arith.index_cast %51 : i32 to index
    %c0_20 = arith.constant 0 : index
    %53 = vector.load %arg11[%52, %c0_20] : memref<64x96xf32, #tpu.memory_space<vmem>>, vector<8x96xf32>
    %54 = arith.index_cast %51 : i32 to index
    %c0_21 = arith.constant 0 : index
    %55 = vector.load %arg1[%54, %c0_21] : memref<64x1xf32, #tpu.memory_space<vmem>>, vector<8x1xf32>
    %c0_22 = arith.constant 0 : index
    %c0_23 = arith.constant 0 : index
    %56 = vector.load %arg3[%c0_22, %c0_23] : memref<32x96xf32, #tpu.memory_space<vmem>>, vector<32x96xf32>
    %cst_24 = arith.constant dense<0.000000e+00> : vector<8x96xf32>
    %57 = tpu.matmul %49, %56, %cst_24 {dimension_numbers = #tpu.dot_dimension_numbers<[1], [0], [0], [1], [0, 0, 1, 1], [], []>} : vector<8x32xf32>, vector<32x96xf32>, vector<8x96xf32> -> vector<8x96xf32>
    %c0_25 = arith.constant 0 : index
    %c0_26 = arith.constant 0 : index
    %58 = vector.load %arg5[%c0_25, %c0_26] : memref<1x96xf32, #tpu.memory_space<vmem>>, vector<1x96xf32>
    %59 = vector.broadcast %58 : vector<1x96xf32> to vector<8x96xf32>
    %60 = arith.addf %57, %59 : vector<8x96xf32>
    %61 = vector.extract_strided_slice %53 {offsets = [0, 0], sizes = [8, 32], strides = [1, 1]} : vector<8x96xf32> to vector<8x32xf32>
    %62 = vector.extract_strided_slice %60 {offsets = [0, 0], sizes = [8, 32], strides = [1, 1]} : vector<8x96xf32> to vector<8x32xf32>
    %63 = arith.addf %61, %62 : vector<8x32xf32>
    %64 = arith.negf %63 : vector<8x32xf32>
    %65 = math.exp %64 : vector<8x32xf32>
    %cst_27 = arith.constant 1.000000e+00 : f32
    %66 = vector.broadcast %cst_27 : f32 to vector<8x32xf32>
    %67 = arith.addf %66, %65 : vector<8x32xf32>
    %68 = arith.divf %66, %67 : vector<8x32xf32>
    %69 = vector.extract_strided_slice %53 {offsets = [0, 32], sizes = [8, 32], strides = [1, 1]} : vector<8x96xf32> to vector<8x32xf32>
    %70 = vector.extract_strided_slice %60 {offsets = [0, 32], sizes = [8, 32], strides = [1, 1]} : vector<8x96xf32> to vector<8x32xf32>
    %71 = arith.addf %69, %70 : vector<8x32xf32>
    %72 = arith.negf %71 : vector<8x32xf32>
    %73 = math.exp %72 : vector<8x32xf32>
    %cst_28 = arith.constant 1.000000e+00 : f32
    %74 = vector.broadcast %cst_28 : f32 to vector<8x32xf32>
    %75 = arith.addf %74, %73 : vector<8x32xf32>
    %76 = arith.divf %74, %75 : vector<8x32xf32>
    %77 = vector.extract_strided_slice %53 {offsets = [0, 64], sizes = [8, 32], strides = [1, 1]} : vector<8x96xf32> to vector<8x32xf32>
    %78 = vector.extract_strided_slice %60 {offsets = [0, 64], sizes = [8, 32], strides = [1, 1]} : vector<8x96xf32> to vector<8x32xf32>
    %79 = arith.mulf %68, %78 : vector<8x32xf32>
    %80 = arith.addf %77, %79 : vector<8x32xf32>
    %81 = math.tanh %80 : vector<8x32xf32>
    %cst_29 = arith.constant 1.000000e+00 : f32
    %82 = vector.broadcast %cst_29 : f32 to vector<8x32xf32>
    %83 = arith.subf %82, %76 : vector<8x32xf32>
    %84 = arith.mulf %83, %81 : vector<8x32xf32>
    %85 = arith.mulf %76, %49 : vector<8x32xf32>
    %86 = arith.addf %84, %85 : vector<8x32xf32>
    %cst_30 = arith.constant 5.000000e-01 : f32
    %87 = vector.broadcast %cst_30 : f32 to vector<8x1xf32>
    %88 = arith.cmpf ogt, %55, %87 : vector<8x1xf32>
    %89 = vector.shape_cast %88 : vector<8x1xi1> to vector<8x1xi1>
    %90 = vector.broadcast %89 : vector<8x1xi1> to vector<8x32xi1>
    %91 = arith.select %90, %86, %49 : vector<8x32xi1>, vector<8x32xf32>
    %c2_i32 = arith.constant 2 : i32
    %c8_i32_31 = arith.constant 8 : i32
    %92 = arith.muli %c2_i32, %c8_i32_31 : i32
    %93 = tpu.assume_multiple %92, 8 : i32
    %94 = arith.index_cast %93 : i32 to index
    %c0_32 = arith.constant 0 : index
    %95 = vector.load %arg11[%94, %c0_32] : memref<64x96xf32, #tpu.memory_space<vmem>>, vector<8x96xf32>
    %96 = arith.index_cast %93 : i32 to index
    %c0_33 = arith.constant 0 : index
    %97 = vector.load %arg1[%96, %c0_33] : memref<64x1xf32, #tpu.memory_space<vmem>>, vector<8x1xf32>
    %c0_34 = arith.constant 0 : index
    %c0_35 = arith.constant 0 : index
    %98 = vector.load %arg3[%c0_34, %c0_35] : memref<32x96xf32, #tpu.memory_space<vmem>>, vector<32x96xf32>
    %cst_36 = arith.constant dense<0.000000e+00> : vector<8x96xf32>
    %99 = tpu.matmul %91, %98, %cst_36 {dimension_numbers = #tpu.dot_dimension_numbers<[1], [0], [0], [1], [0, 0, 1, 1], [], []>} : vector<8x32xf32>, vector<32x96xf32>, vector<8x96xf32> -> vector<8x96xf32>
    %c0_37 = arith.constant 0 : index
    %c0_38 = arith.constant 0 : index
    %100 = vector.load %arg5[%c0_37, %c0_38] : memref<1x96xf32, #tpu.memory_space<vmem>>, vector<1x96xf32>
    %101 = vector.broadcast %100 : vector<1x96xf32> to vector<8x96xf32>
    %102 = arith.addf %99, %101 : vector<8x96xf32>
    %103 = vector.extract_strided_slice %95 {offsets = [0, 0], sizes = [8, 32], strides = [1, 1]} : vector<8x96xf32> to vector<8x32xf32>
    %104 = vector.extract_strided_slice %102 {offsets = [0, 0], sizes = [8, 32], strides = [1, 1]} : vector<8x96xf32> to vector<8x32xf32>
    %105 = arith.addf %103, %104 : vector<8x32xf32>
    %106 = arith.negf %105 : vector<8x32xf32>
    %107 = math.exp %106 : vector<8x32xf32>
    %cst_39 = arith.constant 1.000000e+00 : f32
    %108 = vector.broadcast %cst_39 : f32 to vector<8x32xf32>
    %109 = arith.addf %108, %107 : vector<8x32xf32>
    %110 = arith.divf %108, %109 : vector<8x32xf32>
    %111 = vector.extract_strided_slice %95 {offsets = [0, 32], sizes = [8, 32], strides = [1, 1]} : vector<8x96xf32> to vector<8x32xf32>
    %112 = vector.extract_strided_slice %102 {offsets = [0, 32], sizes = [8, 32], strides = [1, 1]} : vector<8x96xf32> to vector<8x32xf32>
    %113 = arith.addf %111, %112 : vector<8x32xf32>
    %114 = arith.negf %113 : vector<8x32xf32>
    %115 = math.exp %114 : vector<8x32xf32>
    %cst_40 = arith.constant 1.000000e+00 : f32
    %116 = vector.broadcast %cst_40 : f32 to vector<8x32xf32>
    %117 = arith.addf %116, %115 : vector<8x32xf32>
    %118 = arith.divf %116, %117 : vector<8x32xf32>
    %119 = vector.extract_strided_slice %95 {offsets = [0, 64], sizes = [8, 32], strides = [1, 1]} : vector<8x96xf32> to vector<8x32xf32>
    %120 = vector.extract_strided_slice %102 {offsets = [0, 64], sizes = [8, 32], strides = [1, 1]} : vector<8x96xf32> to vector<8x32xf32>
    %121 = arith.mulf %110, %120 : vector<8x32xf32>
    %122 = arith.addf %119, %121 : vector<8x32xf32>
    %123 = math.tanh %122 : vector<8x32xf32>
    %cst_41 = arith.constant 1.000000e+00 : f32
    %124 = vector.broadcast %cst_41 : f32 to vector<8x32xf32>
    %125 = arith.subf %124, %118 : vector<8x32xf32>
    %126 = arith.mulf %125, %123 : vector<8x32xf32>
    %127 = arith.mulf %118, %91 : vector<8x32xf32>
    %128 = arith.addf %126, %127 : vector<8x32xf32>
    %cst_42 = arith.constant 5.000000e-01 : f32
    %129 = vector.broadcast %cst_42 : f32 to vector<8x1xf32>
    %130 = arith.cmpf ogt, %97, %129 : vector<8x1xf32>
    %131 = vector.shape_cast %130 : vector<8x1xi1> to vector<8x1xi1>
    %132 = vector.broadcast %131 : vector<8x1xi1> to vector<8x32xi1>
    %133 = arith.select %132, %128, %91 : vector<8x32xi1>, vector<8x32xf32>
    %c3_i32 = arith.constant 3 : i32
    %c8_i32_43 = arith.constant 8 : i32
    %134 = arith.muli %c3_i32, %c8_i32_43 : i32
    %135 = tpu.assume_multiple %134, 8 : i32
    %136 = arith.index_cast %135 : i32 to index
    %c0_44 = arith.constant 0 : index
    %137 = vector.load %arg11[%136, %c0_44] : memref<64x96xf32, #tpu.memory_space<vmem>>, vector<8x96xf32>
    %138 = arith.index_cast %135 : i32 to index
    %c0_45 = arith.constant 0 : index
    %139 = vector.load %arg1[%138, %c0_45] : memref<64x1xf32, #tpu.memory_space<vmem>>, vector<8x1xf32>
    %c0_46 = arith.constant 0 : index
    %c0_47 = arith.constant 0 : index
    %140 = vector.load %arg3[%c0_46, %c0_47] : memref<32x96xf32, #tpu.memory_space<vmem>>, vector<32x96xf32>
    %cst_48 = arith.constant dense<0.000000e+00> : vector<8x96xf32>
    %141 = tpu.matmul %133, %140, %cst_48 {dimension_numbers = #tpu.dot_dimension_numbers<[1], [0], [0], [1], [0, 0, 1, 1], [], []>} : vector<8x32xf32>, vector<32x96xf32>, vector<8x96xf32> -> vector<8x96xf32>
    %c0_49 = arith.constant 0 : index
    %c0_50 = arith.constant 0 : index
    %142 = vector.load %arg5[%c0_49, %c0_50] : memref<1x96xf32, #tpu.memory_space<vmem>>, vector<1x96xf32>
    %143 = vector.broadcast %142 : vector<1x96xf32> to vector<8x96xf32>
    %144 = arith.addf %141, %143 : vector<8x96xf32>
    %145 = vector.extract_strided_slice %137 {offsets = [0, 0], sizes = [8, 32], strides = [1, 1]} : vector<8x96xf32> to vector<8x32xf32>
    %146 = vector.extract_strided_slice %144 {offsets = [0, 0], sizes = [8, 32], strides = [1, 1]} : vector<8x96xf32> to vector<8x32xf32>
    %147 = arith.addf %145, %146 : vector<8x32xf32>
    %148 = arith.negf %147 : vector<8x32xf32>
    %149 = math.exp %148 : vector<8x32xf32>
    %cst_51 = arith.constant 1.000000e+00 : f32
    %150 = vector.broadcast %cst_51 : f32 to vector<8x32xf32>
    %151 = arith.addf %150, %149 : vector<8x32xf32>
    %152 = arith.divf %150, %151 : vector<8x32xf32>
    %153 = vector.extract_strided_slice %137 {offsets = [0, 32], sizes = [8, 32], strides = [1, 1]} : vector<8x96xf32> to vector<8x32xf32>
    %154 = vector.extract_strided_slice %144 {offsets = [0, 32], sizes = [8, 32], strides = [1, 1]} : vector<8x96xf32> to vector<8x32xf32>
    %155 = arith.addf %153, %154 : vector<8x32xf32>
    %156 = arith.negf %155 : vector<8x32xf32>
    %157 = math.exp %156 : vector<8x32xf32>
    %cst_52 = arith.constant 1.000000e+00 : f32
    %158 = vector.broadcast %cst_52 : f32 to vector<8x32xf32>
    %159 = arith.addf %158, %157 : vector<8x32xf32>
    %160 = arith.divf %158, %159 : vector<8x32xf32>
    %161 = vector.extract_strided_slice %137 {offsets = [0, 64], sizes = [8, 32], strides = [1, 1]} : vector<8x96xf32> to vector<8x32xf32>
    %162 = vector.extract_strided_slice %144 {offsets = [0, 64], sizes = [8, 32], strides = [1, 1]} : vector<8x96xf32> to vector<8x32xf32>
    %163 = arith.mulf %152, %162 : vector<8x32xf32>
    %164 = arith.addf %161, %163 : vector<8x32xf32>
    %165 = math.tanh %164 : vector<8x32xf32>
    %cst_53 = arith.constant 1.000000e+00 : f32
    %166 = vector.broadcast %cst_53 : f32 to vector<8x32xf32>
    %167 = arith.subf %166, %160 : vector<8x32xf32>
    %168 = arith.mulf %167, %165 : vector<8x32xf32>
    %169 = arith.mulf %160, %133 : vector<8x32xf32>
    %170 = arith.addf %168, %169 : vector<8x32xf32>
    %cst_54 = arith.constant 5.000000e-01 : f32
    %171 = vector.broadcast %cst_54 : f32 to vector<8x1xf32>
    %172 = arith.cmpf ogt, %139, %171 : vector<8x1xf32>
    %173 = vector.shape_cast %172 : vector<8x1xi1> to vector<8x1xi1>
    %174 = vector.broadcast %173 : vector<8x1xi1> to vector<8x32xi1>
    %175 = arith.select %174, %170, %133 : vector<8x32xi1>, vector<8x32xf32>
    %c4_i32 = arith.constant 4 : i32
    %c8_i32_55 = arith.constant 8 : i32
    %176 = arith.muli %c4_i32, %c8_i32_55 : i32
    %177 = tpu.assume_multiple %176, 8 : i32
    %178 = arith.index_cast %177 : i32 to index
    %c0_56 = arith.constant 0 : index
    %179 = vector.load %arg11[%178, %c0_56] : memref<64x96xf32, #tpu.memory_space<vmem>>, vector<8x96xf32>
    %180 = arith.index_cast %177 : i32 to index
    %c0_57 = arith.constant 0 : index
    %181 = vector.load %arg1[%180, %c0_57] : memref<64x1xf32, #tpu.memory_space<vmem>>, vector<8x1xf32>
    %c0_58 = arith.constant 0 : index
    %c0_59 = arith.constant 0 : index
    %182 = vector.load %arg3[%c0_58, %c0_59] : memref<32x96xf32, #tpu.memory_space<vmem>>, vector<32x96xf32>
    %cst_60 = arith.constant dense<0.000000e+00> : vector<8x96xf32>
    %183 = tpu.matmul %175, %182, %cst_60 {dimension_numbers = #tpu.dot_dimension_numbers<[1], [0], [0], [1], [0, 0, 1, 1], [], []>} : vector<8x32xf32>, vector<32x96xf32>, vector<8x96xf32> -> vector<8x96xf32>
    %c0_61 = arith.constant 0 : index
    %c0_62 = arith.constant 0 : index
    %184 = vector.load %arg5[%c0_61, %c0_62] : memref<1x96xf32, #tpu.memory_space<vmem>>, vector<1x96xf32>
    %185 = vector.broadcast %184 : vector<1x96xf32> to vector<8x96xf32>
    %186 = arith.addf %183, %185 : vector<8x96xf32>
    %187 = vector.extract_strided_slice %179 {offsets = [0, 0], sizes = [8, 32], strides = [1, 1]} : vector<8x96xf32> to vector<8x32xf32>
    %188 = vector.extract_strided_slice %186 {offsets = [0, 0], sizes = [8, 32], strides = [1, 1]} : vector<8x96xf32> to vector<8x32xf32>
    %189 = arith.addf %187, %188 : vector<8x32xf32>
    %190 = arith.negf %189 : vector<8x32xf32>
    %191 = math.exp %190 : vector<8x32xf32>
    %cst_63 = arith.constant 1.000000e+00 : f32
    %192 = vector.broadcast %cst_63 : f32 to vector<8x32xf32>
    %193 = arith.addf %192, %191 : vector<8x32xf32>
    %194 = arith.divf %192, %193 : vector<8x32xf32>
    %195 = vector.extract_strided_slice %179 {offsets = [0, 32], sizes = [8, 32], strides = [1, 1]} : vector<8x96xf32> to vector<8x32xf32>
    %196 = vector.extract_strided_slice %186 {offsets = [0, 32], sizes = [8, 32], strides = [1, 1]} : vector<8x96xf32> to vector<8x32xf32>
    %197 = arith.addf %195, %196 : vector<8x32xf32>
    %198 = arith.negf %197 : vector<8x32xf32>
    %199 = math.exp %198 : vector<8x32xf32>
    %cst_64 = arith.constant 1.000000e+00 : f32
    %200 = vector.broadcast %cst_64 : f32 to vector<8x32xf32>
    %201 = arith.addf %200, %199 : vector<8x32xf32>
    %202 = arith.divf %200, %201 : vector<8x32xf32>
    %203 = vector.extract_strided_slice %179 {offsets = [0, 64], sizes = [8, 32], strides = [1, 1]} : vector<8x96xf32> to vector<8x32xf32>
    %204 = vector.extract_strided_slice %186 {offsets = [0, 64], sizes = [8, 32], strides = [1, 1]} : vector<8x96xf32> to vector<8x32xf32>
    %205 = arith.mulf %194, %204 : vector<8x32xf32>
    %206 = arith.addf %203, %205 : vector<8x32xf32>
    %207 = math.tanh %206 : vector<8x32xf32>
    %cst_65 = arith.constant 1.000000e+00 : f32
    %208 = vector.broadcast %cst_65 : f32 to vector<8x32xf32>
    %209 = arith.subf %208, %202 : vector<8x32xf32>
    %210 = arith.mulf %209, %207 : vector<8x32xf32>
    %211 = arith.mulf %202, %175 : vector<8x32xf32>
    %212 = arith.addf %210, %211 : vector<8x32xf32>
    %cst_66 = arith.constant 5.000000e-01 : f32
    %213 = vector.broadcast %cst_66 : f32 to vector<8x1xf32>
    %214 = arith.cmpf ogt, %181, %213 : vector<8x1xf32>
    %215 = vector.shape_cast %214 : vector<8x1xi1> to vector<8x1xi1>
    %216 = vector.broadcast %215 : vector<8x1xi1> to vector<8x32xi1>
    %217 = arith.select %216, %212, %175 : vector<8x32xi1>, vector<8x32xf32>
    %c5_i32 = arith.constant 5 : i32
    %c8_i32_67 = arith.constant 8 : i32
    %218 = arith.muli %c5_i32, %c8_i32_67 : i32
    %219 = tpu.assume_multiple %218, 8 : i32
    %220 = arith.index_cast %219 : i32 to index
    %c0_68 = arith.constant 0 : index
    %221 = vector.load %arg11[%220, %c0_68] : memref<64x96xf32, #tpu.memory_space<vmem>>, vector<8x96xf32>
    %222 = arith.index_cast %219 : i32 to index
    %c0_69 = arith.constant 0 : index
    %223 = vector.load %arg1[%222, %c0_69] : memref<64x1xf32, #tpu.memory_space<vmem>>, vector<8x1xf32>
    %c0_70 = arith.constant 0 : index
    %c0_71 = arith.constant 0 : index
    %224 = vector.load %arg3[%c0_70, %c0_71] : memref<32x96xf32, #tpu.memory_space<vmem>>, vector<32x96xf32>
    %cst_72 = arith.constant dense<0.000000e+00> : vector<8x96xf32>
    %225 = tpu.matmul %217, %224, %cst_72 {dimension_numbers = #tpu.dot_dimension_numbers<[1], [0], [0], [1], [0, 0, 1, 1], [], []>} : vector<8x32xf32>, vector<32x96xf32>, vector<8x96xf32> -> vector<8x96xf32>
    %c0_73 = arith.constant 0 : index
    %c0_74 = arith.constant 0 : index
    %226 = vector.load %arg5[%c0_73, %c0_74] : memref<1x96xf32, #tpu.memory_space<vmem>>, vector<1x96xf32>
    %227 = vector.broadcast %226 : vector<1x96xf32> to vector<8x96xf32>
    %228 = arith.addf %225, %227 : vector<8x96xf32>
    %229 = vector.extract_strided_slice %221 {offsets = [0, 0], sizes = [8, 32], strides = [1, 1]} : vector<8x96xf32> to vector<8x32xf32>
    %230 = vector.extract_strided_slice %228 {offsets = [0, 0], sizes = [8, 32], strides = [1, 1]} : vector<8x96xf32> to vector<8x32xf32>
    %231 = arith.addf %229, %230 : vector<8x32xf32>
    %232 = arith.negf %231 : vector<8x32xf32>
    %233 = math.exp %232 : vector<8x32xf32>
    %cst_75 = arith.constant 1.000000e+00 : f32
    %234 = vector.broadcast %cst_75 : f32 to vector<8x32xf32>
    %235 = arith.addf %234, %233 : vector<8x32xf32>
    %236 = arith.divf %234, %235 : vector<8x32xf32>
    %237 = vector.extract_strided_slice %221 {offsets = [0, 32], sizes = [8, 32], strides = [1, 1]} : vector<8x96xf32> to vector<8x32xf32>
    %238 = vector.extract_strided_slice %228 {offsets = [0, 32], sizes = [8, 32], strides = [1, 1]} : vector<8x96xf32> to vector<8x32xf32>
    %239 = arith.addf %237, %238 : vector<8x32xf32>
    %240 = arith.negf %239 : vector<8x32xf32>
    %241 = math.exp %240 : vector<8x32xf32>
    %cst_76 = arith.constant 1.000000e+00 : f32
    %242 = vector.broadcast %cst_76 : f32 to vector<8x32xf32>
    %243 = arith.addf %242, %241 : vector<8x32xf32>
    %244 = arith.divf %242, %243 : vector<8x32xf32>
    %245 = vector.extract_strided_slice %221 {offsets = [0, 64], sizes = [8, 32], strides = [1, 1]} : vector<8x96xf32> to vector<8x32xf32>
    %246 = vector.extract_strided_slice %228 {offsets = [0, 64], sizes = [8, 32], strides = [1, 1]} : vector<8x96xf32> to vector<8x32xf32>
    %247 = arith.mulf %236, %246 : vector<8x32xf32>
    %248 = arith.addf %245, %247 : vector<8x32xf32>
    %249 = math.tanh %248 : vector<8x32xf32>
    %cst_77 = arith.constant 1.000000e+00 : f32
    %250 = vector.broadcast %cst_77 : f32 to vector<8x32xf32>
    %251 = arith.subf %250, %244 : vector<8x32xf32>
    %252 = arith.mulf %251, %249 : vector<8x32xf32>
    %253 = arith.mulf %244, %217 : vector<8x32xf32>
    %254 = arith.addf %252, %253 : vector<8x32xf32>
    %cst_78 = arith.constant 5.000000e-01 : f32
    %255 = vector.broadcast %cst_78 : f32 to vector<8x1xf32>
    %256 = arith.cmpf ogt, %223, %255 : vector<8x1xf32>
    %257 = vector.shape_cast %256 : vector<8x1xi1> to vector<8x1xi1>
    %258 = vector.broadcast %257 : vector<8x1xi1> to vector<8x32xi1>
    %259 = arith.select %258, %254, %217 : vector<8x32xi1>, vector<8x32xf32>
    %c6_i32 = arith.constant 6 : i32
    %c8_i32_79 = arith.constant 8 : i32
    %260 = arith.muli %c6_i32, %c8_i32_79 : i32
    %261 = tpu.assume_multiple %260, 8 : i32
    %262 = arith.index_cast %261 : i32 to index
    %c0_80 = arith.constant 0 : index
    %263 = vector.load %arg11[%262, %c0_80] : memref<64x96xf32, #tpu.memory_space<vmem>>, vector<8x96xf32>
    %264 = arith.index_cast %261 : i32 to index
    %c0_81 = arith.constant 0 : index
    %265 = vector.load %arg1[%264, %c0_81] : memref<64x1xf32, #tpu.memory_space<vmem>>, vector<8x1xf32>
    %c0_82 = arith.constant 0 : index
    %c0_83 = arith.constant 0 : index
    %266 = vector.load %arg3[%c0_82, %c0_83] : memref<32x96xf32, #tpu.memory_space<vmem>>, vector<32x96xf32>
    %cst_84 = arith.constant dense<0.000000e+00> : vector<8x96xf32>
    %267 = tpu.matmul %259, %266, %cst_84 {dimension_numbers = #tpu.dot_dimension_numbers<[1], [0], [0], [1], [0, 0, 1, 1], [], []>} : vector<8x32xf32>, vector<32x96xf32>, vector<8x96xf32> -> vector<8x96xf32>
    %c0_85 = arith.constant 0 : index
    %c0_86 = arith.constant 0 : index
    %268 = vector.load %arg5[%c0_85, %c0_86] : memref<1x96xf32, #tpu.memory_space<vmem>>, vector<1x96xf32>
    %269 = vector.broadcast %268 : vector<1x96xf32> to vector<8x96xf32>
    %270 = arith.addf %267, %269 : vector<8x96xf32>
    %271 = vector.extract_strided_slice %263 {offsets = [0, 0], sizes = [8, 32], strides = [1, 1]} : vector<8x96xf32> to vector<8x32xf32>
    %272 = vector.extract_strided_slice %270 {offsets = [0, 0], sizes = [8, 32], strides = [1, 1]} : vector<8x96xf32> to vector<8x32xf32>
    %273 = arith.addf %271, %272 : vector<8x32xf32>
    %274 = arith.negf %273 : vector<8x32xf32>
    %275 = math.exp %274 : vector<8x32xf32>
    %cst_87 = arith.constant 1.000000e+00 : f32
    %276 = vector.broadcast %cst_87 : f32 to vector<8x32xf32>
    %277 = arith.addf %276, %275 : vector<8x32xf32>
    %278 = arith.divf %276, %277 : vector<8x32xf32>
    %279 = vector.extract_strided_slice %263 {offsets = [0, 32], sizes = [8, 32], strides = [1, 1]} : vector<8x96xf32> to vector<8x32xf32>
    %280 = vector.extract_strided_slice %270 {offsets = [0, 32], sizes = [8, 32], strides = [1, 1]} : vector<8x96xf32> to vector<8x32xf32>
    %281 = arith.addf %279, %280 : vector<8x32xf32>
    %282 = arith.negf %281 : vector<8x32xf32>
    %283 = math.exp %282 : vector<8x32xf32>
    %cst_88 = arith.constant 1.000000e+00 : f32
    %284 = vector.broadcast %cst_88 : f32 to vector<8x32xf32>
    %285 = arith.addf %284, %283 : vector<8x32xf32>
    %286 = arith.divf %284, %285 : vector<8x32xf32>
    %287 = vector.extract_strided_slice %263 {offsets = [0, 64], sizes = [8, 32], strides = [1, 1]} : vector<8x96xf32> to vector<8x32xf32>
    %288 = vector.extract_strided_slice %270 {offsets = [0, 64], sizes = [8, 32], strides = [1, 1]} : vector<8x96xf32> to vector<8x32xf32>
    %289 = arith.mulf %278, %288 : vector<8x32xf32>
    %290 = arith.addf %287, %289 : vector<8x32xf32>
    %291 = math.tanh %290 : vector<8x32xf32>
    %cst_89 = arith.constant 1.000000e+00 : f32
    %292 = vector.broadcast %cst_89 : f32 to vector<8x32xf32>
    %293 = arith.subf %292, %286 : vector<8x32xf32>
    %294 = arith.mulf %293, %291 : vector<8x32xf32>
    %295 = arith.mulf %286, %259 : vector<8x32xf32>
    %296 = arith.addf %294, %295 : vector<8x32xf32>
    %cst_90 = arith.constant 5.000000e-01 : f32
    %297 = vector.broadcast %cst_90 : f32 to vector<8x1xf32>
    %298 = arith.cmpf ogt, %265, %297 : vector<8x1xf32>
    %299 = vector.shape_cast %298 : vector<8x1xi1> to vector<8x1xi1>
    %300 = vector.broadcast %299 : vector<8x1xi1> to vector<8x32xi1>
    %301 = arith.select %300, %296, %259 : vector<8x32xi1>, vector<8x32xf32>
    %c7_i32 = arith.constant 7 : i32
    %c8_i32_91 = arith.constant 8 : i32
    %302 = arith.muli %c7_i32, %c8_i32_91 : i32
    %303 = tpu.assume_multiple %302, 8 : i32
    %304 = arith.index_cast %303 : i32 to index
    %c0_92 = arith.constant 0 : index
    %305 = vector.load %arg11[%304, %c0_92] : memref<64x96xf32, #tpu.memory_space<vmem>>, vector<8x96xf32>
    %306 = arith.index_cast %303 : i32 to index
    %c0_93 = arith.constant 0 : index
    %307 = vector.load %arg1[%306, %c0_93] : memref<64x1xf32, #tpu.memory_space<vmem>>, vector<8x1xf32>
    %c0_94 = arith.constant 0 : index
    %c0_95 = arith.constant 0 : index
    %308 = vector.load %arg3[%c0_94, %c0_95] : memref<32x96xf32, #tpu.memory_space<vmem>>, vector<32x96xf32>
    %cst_96 = arith.constant dense<0.000000e+00> : vector<8x96xf32>
    %309 = tpu.matmul %301, %308, %cst_96 {dimension_numbers = #tpu.dot_dimension_numbers<[1], [0], [0], [1], [0, 0, 1, 1], [], []>} : vector<8x32xf32>, vector<32x96xf32>, vector<8x96xf32> -> vector<8x96xf32>
    %c0_97 = arith.constant 0 : index
    %c0_98 = arith.constant 0 : index
    %310 = vector.load %arg5[%c0_97, %c0_98] : memref<1x96xf32, #tpu.memory_space<vmem>>, vector<1x96xf32>
    %311 = vector.broadcast %310 : vector<1x96xf32> to vector<8x96xf32>
    %312 = arith.addf %309, %311 : vector<8x96xf32>
    %313 = vector.extract_strided_slice %305 {offsets = [0, 0], sizes = [8, 32], strides = [1, 1]} : vector<8x96xf32> to vector<8x32xf32>
    %314 = vector.extract_strided_slice %312 {offsets = [0, 0], sizes = [8, 32], strides = [1, 1]} : vector<8x96xf32> to vector<8x32xf32>
    %315 = arith.addf %313, %314 : vector<8x32xf32>
    %316 = arith.negf %315 : vector<8x32xf32>
    %317 = math.exp %316 : vector<8x32xf32>
    %cst_99 = arith.constant 1.000000e+00 : f32
    %318 = vector.broadcast %cst_99 : f32 to vector<8x32xf32>
    %319 = arith.addf %318, %317 : vector<8x32xf32>
    %320 = arith.divf %318, %319 : vector<8x32xf32>
    %321 = vector.extract_strided_slice %305 {offsets = [0, 32], sizes = [8, 32], strides = [1, 1]} : vector<8x96xf32> to vector<8x32xf32>
    %322 = vector.extract_strided_slice %312 {offsets = [0, 32], sizes = [8, 32], strides = [1, 1]} : vector<8x96xf32> to vector<8x32xf32>
    %323 = arith.addf %321, %322 : vector<8x32xf32>
    %324 = arith.negf %323 : vector<8x32xf32>
    %325 = math.exp %324 : vector<8x32xf32>
    %cst_100 = arith.constant 1.000000e+00 : f32
    %326 = vector.broadcast %cst_100 : f32 to vector<8x32xf32>
    %327 = arith.addf %326, %325 : vector<8x32xf32>
    %328 = arith.divf %326, %327 : vector<8x32xf32>
    %329 = vector.extract_strided_slice %305 {offsets = [0, 64], sizes = [8, 32], strides = [1, 1]} : vector<8x96xf32> to vector<8x32xf32>
    %330 = vector.extract_strided_slice %312 {offsets = [0, 64], sizes = [8, 32], strides = [1, 1]} : vector<8x96xf32> to vector<8x32xf32>
    %331 = arith.mulf %320, %330 : vector<8x32xf32>
    %332 = arith.addf %329, %331 : vector<8x32xf32>
    %333 = math.tanh %332 : vector<8x32xf32>
    %cst_101 = arith.constant 1.000000e+00 : f32
    %334 = vector.broadcast %cst_101 : f32 to vector<8x32xf32>
    %335 = arith.subf %334, %328 : vector<8x32xf32>
    %336 = arith.mulf %335, %333 : vector<8x32xf32>
    %337 = arith.mulf %328, %301 : vector<8x32xf32>
    %338 = arith.addf %336, %337 : vector<8x32xf32>
    %cst_102 = arith.constant 5.000000e-01 : f32
    %339 = vector.broadcast %cst_102 : f32 to vector<8x1xf32>
    %340 = arith.cmpf ogt, %307, %339 : vector<8x1xf32>
    %341 = vector.shape_cast %340 : vector<8x1xi1> to vector<8x1xi1>
    %342 = vector.broadcast %341 : vector<8x1xi1> to vector<8x32xi1>
    %343 = arith.select %342, %338, %301 : vector<8x32xi1>, vector<8x32xf32>
    %c8_i32_103 = arith.constant 8 : i32
    %c0_104 = arith.constant 0 : index
    %c0_105 = arith.constant 0 : index
    %344 = vector.load %arg6[%c0_104, %c0_105] : memref<32x4xf32, #tpu.memory_space<vmem>>, vector<32x4xf32>
    %cst_106 = arith.constant dense<0.000000e+00> : vector<8x4xf32>
    %345 = tpu.matmul %343, %344, %cst_106 {dimension_numbers = #tpu.dot_dimension_numbers<[1], [0], [0], [1], [0, 0, 1, 1], [], []>} : vector<8x32xf32>, vector<32x4xf32>, vector<8x4xf32> -> vector<8x4xf32>
    %c0_107 = arith.constant 0 : index
    %c0_108 = arith.constant 0 : index
    %346 = vector.load %arg7[%c0_107, %c0_108] : memref<1x4xf32, #tpu.memory_space<vmem>>, vector<1x4xf32>
    %347 = vector.broadcast %346 : vector<1x4xf32> to vector<8x4xf32>
    %348 = arith.addf %345, %347 : vector<8x4xf32>
    %cst_109 = arith.constant dense<0xFF800000> : vector<8xf32>
    %349 = vector.multi_reduction <maximumf>, %348, %cst_109 [1] : vector<8x4xf32> to vector<8xf32>
    %350 = vector.shape_cast %349 : vector<8xf32> to vector<8x1xf32>
    %351 = vector.broadcast %350 : vector<8x1xf32> to vector<8x4xf32>
    %352 = arith.subf %348, %351 : vector<8x4xf32>
    %353 = math.exp %352 : vector<8x4xf32>
    %cst_110 = arith.constant dense<0.000000e+00> : vector<8xf32>
    %354 = vector.multi_reduction <add>, %353, %cst_110 [1] : vector<8x4xf32> to vector<8xf32>
    %355 = vector.shape_cast %354 : vector<8xf32> to vector<8x1xf32>
    %356 = tpu.reciprocal %355 : vector<8x1xf32> -> vector<8x1xf32>
    %357 = vector.broadcast %356 : vector<8x1xf32> to vector<8x4xf32>
    %358 = arith.mulf %353, %357 : vector<8x4xf32>
    %c0_111 = arith.constant 0 : index
    %c0_112 = arith.constant 0 : index
    %359 = vector.load %arg8[%c0_111, %c0_112] : memref<8x4xf32, #tpu.memory_space<vmem>>, vector<8x4xf32>
    tpu.vector_store %arg8[%c0_111, %c0_112], %358 {strides = array<i32>} : memref<8x4xf32, #tpu.memory_space<vmem>>, vector<8x4xf32>,
    %c0_113 = arith.constant 0 : index
    %c0_114 = arith.constant 0 : index
    %360 = vector.load %arg9[%c0_113, %c0_114] : memref<8x32xf32, #tpu.memory_space<vmem>>, vector<8x32xf32>
    tpu.vector_store %arg9[%c0_113, %c0_114], %343 {strides = array<i32>} : memref<8x32xf32, #tpu.memory_space<vmem>>, vector<8x32xf32>,
    %c0_115 = arith.constant 0 : index
    %c0_116 = arith.constant 0 : index
    %361 = vector.load %arg10[%c0_115, %c0_116] : memref<8x4xf32, #tpu.memory_space<vmem>>, vector<8x4xf32>
    tpu.vector_store %arg10[%c0_115, %c0_116], %348 {strides = array<i32>} : memref<8x4xf32, #tpu.memory_space<vmem>>, vector<8x4xf32>,
    return
  }
}

</mosaic_0001>

<bundles_post_ra>
// kernel: listener_forward.1
= control target key start
LH: loop header
LB: loop body
LE: loop exit
PB: predicated region body
PF: predicated region fallthrough
CT: control target
= control target key end

     0   :  { %v1476_v0 = vmov 0.0   ;;  %vm1477_vm0 = vmmov 0   ;;  %vm51_vm1 = vcmask 261120   ;;  %vm181_vm2 = vcmask 785408   ;;  %s1478_s15 = smov 64   ;;  %s1480_s16 = smov 96   ;;  %s1829_s2 = inlined_call_operand.vmem [shape: f32[32,96], index: 2, kind: input, shape index: {}]   ;;  %s1830_s3 = inlined_call_operand.vmem [shape: f32[32,96], index: 3, kind: input, shape index: {}]   ;;  %s1831_s0 = inlined_call_operand.vmem [shape: f32[64,32], index: 0, kind: input, shape index: {}]   ;;  %s1832_s5 = inlined_call_operand.vmem [shape: f32[1,96], index: 5, kind: input, shape index: {}]   ;;  %s1833_s4 = inlined_call_operand.vmem [shape: f32[1,96], index: 4, kind: input, shape index: {}]   ;;  %s1834_s1 = inlined_call_operand.vmem [shape: f32[64,1], index: 1, kind: input, shape index: {}]   ;;  %s1835_s6 = inlined_call_operand.vmem [shape: f32[32,4], index: 6, kind: input, shape index: {}]   ;;  %s1836_s9 = inlined_call_operand.vmem [shape: f32[8,32], index: 9, kind: output, shape index: {1}]   ;;  %s1837_s7 = inlined_call_operand.vmem [shape: f32[1,4], index: 7, kind: input, shape index: {}]   ;;  %s1838_s10 = inlined_call_operand.vmem [shape: f32[8,4], index: 10, kind: output, shape index: {2}]   ;;  %s1839_s8 = inlined_call_operand.vmem [shape: f32[8,4], index: 8, kind: output, shape index: {0}]  }
   0x1   :  { %1318 = vmatprep.subr.mxu1 %v1476_v0  ;;  %v43_v1 = vld [vmem:[%s1829_s2 + $0x18] sm:$0xff]  ;;  %v42_v3 = vld [vmem:[%s1829_s2 + $0x10] sm:$0xff]  ;;  %1326 = vmatprep.mubr.msk.f32.mxu1 %vm1477_vm0, %v1476_v0  ;;  %v41_v5 = vld [vmem:[%s1829_s2 + $0x8] sm:$0xff]  ;;  %v1479_v26 = vmov 0  }
   0x2   :  { %v1543_v2 = vld [vmem:[%s1830_s3 + $0x18] sm:$0xff]  ;;  %1298 = vmatprep.subr.mxu0 %v43_v1  ;;  %v1554_v4 = vld [vmem:[%s1830_s3 + $0x10] sm:$0xff]  ;;  %v1563_v6 = vld [vmem:[%s1830_s3 + $0x8] sm:$0xff]  ;;  %1422 = vset.pattern.permute.xlu1 %v1479_v26 }
   0x3   :  { %1319 = vmatpush3.msra.mxu1 %v1543_v2  ;;  %1299 = vmatpush3.msra.mxu0 %v43_v1  ;;  %v40_v7 = vld [vmem:[%s1829_s2] sm:$0xff]  ;;  %v33_v10 = vld [vmem:[%s1831_s0 + $0x8] sm:$0xff]  ;;  %v34_v57 = vld [vmem:[%s1831_s0 + $0x10] sm:$0xff] }
   0x4   :  { %1320 = vmatprep.subr.mxu1 %v1476_v0  ;;  %1300 = vmatprep.subr.mxu0 %v42_v3  ;;  %v1573_v8 = vld [vmem:[%s1830_s3] sm:$0xff]  ;;  %v1218_v42 = vld [vmem:[%s1834_s1 + $0x8] sm:$0xff]  ;;  %v35_v58 = vld [vmem:[%s1831_s0 + $0x18] sm:$0xff] }
   0x5   :  { %1321 = vmatpush3.msra.mxu1 %v1554_v4  ;;  %1301 = vmatpush3.msra.mxu0 %v42_v3  ;;  %v32_v9 = vld [vmem:[%s1831_s0] sm:$0xff]  ;;  %vm414_vm5 = vcmp.gt.f32.partialorder %v1218_v42, 0.5  ;;  %v37_v60 = vld [vmem:[%s1831_s0 + $0x28] sm:$0xff]  ;;  %v38_v61 = vld [vmem:[%s1831_s0 + $0x30] sm:$0xff] }
   0x6   :  { %1322 = vmatprep.subr.mxu1 %v1476_v0  ;;  %1302 = vmatprep.subr.mxu0 %v41_v5  ;;  %v1610_v11 = vld [vmem:[%s1832_s5] ss:$0 sm:$0xff]  ;;  %v415_v46 = vsel %vm414_vm5, 1, %v1479_v26  ;;  %v39_v63 = vld [vmem:[%s1831_s0 + $0x38] sm:$0xff] }
   0x7   :  { %1323 = vmatpush3.msra.mxu1 %v1563_v6  ;;  %1303 = vmatpush3.msra.mxu0 %v41_v5  ;;  %v1615_v14 = vld [vmem:[%s1833_s4] ss:$0 sm:$0xff] }
   0x8   :  { %1324 = vmatprep.subr.mxu1 %v1476_v0  ;;  %1304 = vmatprep.subr.mxu0 %v40_v7  ;;  %v191_v25 = vld [vmem:[%s1834_s1] sm:$0xff] }
   0x9   :  { %1325 = vmatpush3.msra.mxu1 %v1573_v8  ;;  %1305 = vmatpush3.msra.mxu0 %v40_v7  ;;  %vm302_vm3 = vcmp.gt.f32.partialorder %v191_v25, 0.5  ;;  %v36_v59 = vld [vmem:[%s1831_s0 + $0x20] sm:$0xff] }
   0xa   :  { %1306 = vmatprep.mubr.msk.f32.mxu0 %vm51_vm1, %v32_v9  ;;  %1327 = vmatmul.mubr.f32.vlgmr.msra.gmra.mxu1 %v1476_v0  ;;  %v303_v27 = vsel %vm302_vm3, 1, %v1479_v26 }
   0xb   :  { %1307 = vmatmul.mubr.msk.f32.vlgmr.msra.gmra.mxu0 %vm51_vm1, %v33_v10  ;;  %1329 = vmatprep.subr.mxu1 %v1476_v0 }
   0xc   :  { %1337 = vmatprep.mubr.msk.f32.mxu1 %vm1477_vm0, %v1476_v0  ;;  %1330 = vmatpush3.msra.mxu1 %v1543_v2 }
   0xd   :  { %1340 = vmatprep.subr.mxu0 %v1476_v0  ;;  %1331 = vmatprep.subr.mxu1 %v1476_v0 }
   0xe   :  { %1341 = vmatpush3.msra.mxu0 %v1543_v2  ;;  %1332 = vmatpush3.msra.mxu1 %v1554_v4 }
   0xf   :  { %1342 = vmatprep.subr.mxu0 %v1476_v0  ;;  %1333 = vmatprep.subr.mxu1 %v1476_v0 }
  0x10   :  { %1343 = vmatpush3.msra.mxu0 %v1554_v4  ;;  %1334 = vmatpush3.msra.mxu1 %v1563_v6 }
  0x11   :  { %1344 = vmatprep.subr.mxu0 %v1476_v0  ;;  %1335 = vmatprep.subr.mxu1 %v1476_v0 }
  0x12   :  { %1345 = vmatpush3.msra.mxu0 %v1563_v6  ;;  %1336 = vmatpush3.msra.mxu1 %v1573_v8 }
  0x13   :  { %1346 = vmatprep.subr.mxu0 %v1476_v0  ;;  %1351 = vmatprep.subr.mxu1 %v1476_v0 }
  0x14   :  { %1347 = vmatpush3.msra.mxu0 %v1573_v8  ;;  %1423 = vset.pattern.permute.xlu0 %v1479_v26 }
  0x15   :  { %1362 = vmatprep.subr.mxu0 %v1476_v0  ;;  %305 = vperm.xlu1 %1422, %v303_v27  }
  0x16   :  { %1309 = vmatprep.mubr.msk.f32.mxu0 %vm51_vm1, %v34_v57 }
  0x17   :  { %1310 = vmatmul.mubr.msk.f32.gmra.mxu0 %vm51_vm1, %v35_v58 }
  0x18   :  { %1312 = vmatprep.mubr.msk.f32.mxu0 %vm51_vm1, %v36_v59 }
  0x1b   :  { %1313 = vmatmul.mubr.msk.f32.gmra.mxu0 %vm51_vm1, %v37_v60 }
  0x1c   :  { %1315 = vmatprep.mubr.msk.f32.mxu0 %vm51_vm1, %v38_v61 }
  0x1f   :  { %1316 = vmatmul.mubr.msk.f32.gmra.mxu0 %vm51_vm1, %v39_v63 }
  0x20   :  { %1348 = vmatprep.mubr.msk.f32.mxu0 %vm1477_vm0, %v1476_v0 }
  0x90   :  { %v306_v34 = vpop.permute.xlu1 %305 }
  0x91   :  { %vm307_vm4 = vcmp.eq.s32.totalorder %v306_v34, 1 }
  0xca   :  { %v272_v12 = vpop.f32.mrf.mxu1 }
  0xcb   :  { %v1308_v13 = vpop.f32.mrf.mxu0  ;;  %v273_v15 = vadd.f32 %v1610_v11, %v272_v12 }
  0xcc   :  { %v148_v16 = vadd.f32 %v1308_v13, %v1615_v14  ;;  %v1328_v17 = vpop.f32.mrf.mxu1 }
  0xcd   :  { %v142_v18 = vpop.f32.mrf.mxu0  ;;  %284 = vrot.lane.b32.xlu0 %v273_v15, %s1478_s15 }
  0xce   :  { %183 = vst.msk [vmem:[#allocation2 + $0x8] sm:$0xff] %vm181_vm2, %v148_v16  ;;  %v143_v19 = vadd.f32 %v1615_v14, %v142_v18 }
  0xd0   :  { %182 = vst.msk [vmem:[#allocation2] sm:$0xff] %vm181_vm2, %v143_v19 }
  0xd5   :  { %v310_v47 = vld [vmem:[#allocation2 + $0x8] sm:$0xff] }
  0xd7   :  { %v190_v20 = vld [vmem:[#allocation2] sm:$0xff]  ;;  %v1311_v13 = vpop.f32.mrf.mxu0 }
  0xd8   :  { %v276_v21 = vadd.f32 %v273_v15, %v190_v20  ;;  %v158_v15 = vadd.f32 %v1311_v13, %v1615_v14 }
  0xd9   :  { %v152_v16 = vpop.f32.mrf.mxu0 }
  0xda   :  { %v1217_v22 = vmul.f32 -1.442695, %v276_v21  ;;  %185 = vst.msk [vmem:[#allocation2 + $0x18] sm:$0xff] %vm181_vm2, %v158_v15  ;;  %v153_v17 = vadd.f32 %v1615_v14, %v152_v16 }
  0xdb   :  { %v1314_v18 = vpop.f32.mrf.mxu0 }
  0xdc   :  { %1424 = vpow2.f32 %v1217_v22  ;;  %184 = vst.msk [vmem:[#allocation2 + $0x10] sm:$0xff] %vm181_vm2, %v153_v17  ;;  %v168_v19 = vadd.f32 %v1314_v18, %v1615_v14  ;;  %v1227_v18 = vld [vmem:[%s1834_s1 + $0x20] sm:$0xff] }
  0xdd   :  { %vm750_vm11 = vcmp.gt.f32.partialorder %v1227_v18, 0.5 }
  0xde   :  { %187 = vst.msk [vmem:[#allocation2 + $0x28] sm:$0xff] %vm181_vm2, %v168_v19 }
  0xe9   :  { %v1425_v23 = vpop.eup %1424 }
  0xea   :  { %v280_v24 = vadd.f32 1.0, %v1425_v23 }
  0xec   :  { %1426 = vrcp.f32 %v280_v24 }
  0xf9   :  { %v1427_v28 = vpop.eup %1426 }
  0xfa   :  { %v294_v35 = vsub.f32 1.0, %v1427_v28  ;;  %v300_v37 = vmul.f32 0.0, %v1427_v28 }
 0x13f   :  { %v285_v29 = vpop.permute.xlu0 %284 }
 0x140   :  { %v287_v30 = vmul.f32 %v1427_v28, %v285_v29 }
 0x142   :  { %289 = vrot.lane.b32.xlu0 %v287_v30, %s1478_s15  ;;  %v422_v30 = vld [vmem:[#allocation2 + $0x10] sm:$0xff] }
 0x1b4   :  { %v290_v31 = vpop.permute.xlu0 %289 }
 0x1b5   :  { %v292_v32 = vadd.f32 %v290_v31, %v190_v20  ;;  %v162_v20 = vpop.f32.mrf.mxu0 }
 0x1b6   :  { %v163_v21 = vadd.f32 %v1615_v14, %v162_v20 }
 0x1b7   :  { %1428 = vtanh.f32 %v292_v32  ;;  %v1317_v22 = vpop.f32.mrf.mxu0 }
 0x1b8   :  { %186 = vst.msk [vmem:[#allocation2 + $0x20] sm:$0xff] %vm181_vm2, %v163_v21  ;;  %v178_v23 = vadd.f32 %v1317_v22, %v1615_v14  ;;  %v751_v22 = vsel %vm750_vm11, 1, %v1479_v26 }
 0x1b9   :  { %v172_v24 = vpop.f32.mrf.mxu0 }
 0x1ba   :  { %189 = vst.msk [vmem:[#allocation2 + $0x38] sm:$0xff] %vm181_vm2, %v178_v23  ;;  %v173_v25 = vadd.f32 %v1615_v14, %v172_v24 }
 0x1bc   :  { %188 = vst.msk [vmem:[#allocation2 + $0x30] sm:$0xff] %vm181_vm2, %v173_v25 }
 0x1bf   :  { %v646_v23 = vld [vmem:[#allocation2 + $0x20] sm:$0xff] }
 0x1c4   :  { %v1429_v33 = vpop.eup %1428 }
 0x1c5   :  { %296 = vrot.lane.b32.xlu1 %v1429_v33, %s1480_s16 }
 0x237   :  { %v297_v36 = vpop.permute.xlu1 %296 }
 0x238   :  { %v299_v38 = vmul.f32 %v297_v36, %v294_v35  ;;  %v1221_v35 = vld [vmem:[%s1834_s1 + $0x10] sm:$0xff] }
 0x239   :  { %vm526_vm7 = vcmp.gt.f32.partialorder %v1221_v35, 0.5 }
 0x23a   :  { %v301_v39 = vadd.f32 %v300_v37, %v299_v38  ;;  %v527_v36 = vsel %vm526_vm7, 1, %v1479_v26 }
 0x23c   :  { %v308_v40 = vsel %vm307_vm4, %v301_v39, 0.0  ;;  %vm1179_vm4 = vcmask 31744  }
 0x23d   :  { %314 = vrot.lane.b32.xlu0 %v308_v40, %s1480_s16 }
 0x2af   :  { %v315_v41 = vpop.permute.xlu0 %314 }
 0x2b0   :  { %1338 = vmatmul.mubr.msk.f32.vlgmr.msra.gmra.mxu1 %vm51_vm1, %v315_v41 }
 0x2b1   :  { %1352 = vmatpush3.msra.mxu1 %v1543_v2  ;;  %1359 = vmatprep.mubr.msk.f32.mxu1 %vm1477_vm0, %v1476_v0 }
 0x2b2   :  { %1353 = vmatprep.subr.mxu1 %v1476_v0 }
 0x2b3   :  { %1354 = vmatpush3.msra.mxu1 %v1554_v4 }
 0x2b4   :  { %1355 = vmatprep.subr.mxu1 %v1476_v0 }
 0x2b5   :  { %1356 = vmatpush3.msra.mxu1 %v1563_v6 }
 0x2b6   :  { %1357 = vmatprep.subr.mxu1 %v1476_v0 }
 0x2b7   :  { %1358 = vmatpush3.msra.mxu1 %v1573_v8 }
 0x2b8   :  { %1373 = vmatprep.subr.mxu1 %v1476_v0 }
 0x370   :  { %v384_v43 = vpop.f32.mrf.mxu1 }
 0x371   :  { %v385_v44 = vadd.f32 %v1610_v11, %v384_v43 }
 0x372   :  { %v1339_v45 = vpop.f32.mrf.mxu1 }
 0x373   :  { %396 = vrot.lane.b32.xlu1 %v385_v44, %s1478_s15  ;;  %v388_v48 = vadd.f32 %v385_v44, %v310_v47 }
 0x375   :  { %v1220_v49 = vmul.f32 -1.442695, %v388_v48 }
 0x377   :  { %417 = vperm.xlu1 %1422, %v415_v46   ;;  %1430 = vpow2.f32 %v1220_v49 }
 0x384   :  { %v1431_v50 = vpop.eup %1430 }
 0x385   :  { %v392_v51 = vadd.f32 1.0, %v1431_v50 }
 0x387   :  { %1432 = vrcp.f32 %v392_v51  ;;  %v1224_v51 = vld [vmem:[%s1834_s1 + $0x18] sm:$0xff] }
 0x388   :  { %vm638_vm9 = vcmp.gt.f32.partialorder %v1224_v51, 0.5 }
 0x394   :  { %v1433_v52 = vpop.eup %1432 }
 0x395   :  { %v406_v1 = vsub.f32 1.0, %v1433_v52  ;;  %v412_v7 = vmul.f32 %v1433_v52, %v308_v40 }
 0x3e5   :  { %v397_v53 = vpop.permute.xlu1 %396 }
 0x3e6   :  { %v399_v54 = vmul.f32 %v1433_v52, %v397_v53 }
 0x3e8   :  { %401 = vrot.lane.b32.xlu0 %v399_v54, %s1478_s15 }
 0x3f2   :  { %v418_v5 = vpop.permute.xlu1 %417 }
 0x3f3   :  { %vm419_vm6 = vcmp.eq.s32.totalorder %v418_v5, 1 }
 0x45a   :  { %v402_v55 = vpop.permute.xlu0 %401 }
 0x45b   :  { %v404_v56 = vadd.f32 %v402_v55, %v310_v47  ;;  %v639_v55 = vsel %vm638_vm9, 1, %v1479_v26 }
 0x45d   :  { %1434 = vtanh.f32 %v404_v56  ;;  %v534_v56 = vld [vmem:[#allocation2 + $0x18] sm:$0xff] }
 0x46a   :  { %v1435_v62 = vpop.eup %1434 }
 0x46b   :  { %408 = vrot.lane.b32.xlu0 %v1435_v62, %s1480_s16 }
 0x4dd   :  { %v409_v3 = vpop.permute.xlu0 %408 }
 0x4de   :  { %v411_v9 = vmul.f32 %v409_v3, %v406_v1 }
 0x4e0   :  { %v413_v10 = vadd.f32 %v412_v7, %v411_v9 }
 0x4e2   :  { %v1677_v12 = vsel %vm419_vm6, %v413_v10, %v308_v40 }
 0x4e3   :  { %426 = vrot.lane.b32.xlu1 %v1677_v12, %s1480_s16 }
 0x555   :  { %v427_v27 = vpop.permute.xlu1 %426 }
 0x556   :  { %1349 = vmatmul.mubr.msk.f32.vlgmr.msra.gmra.mxu0 %vm51_vm1, %v427_v27 }
 0x557   :  { %1363 = vmatpush3.msra.mxu0 %v1543_v2  ;;  %1370 = vmatprep.mubr.msk.f32.mxu0 %vm1477_vm0, %v1476_v0 }
 0x558   :  { %1364 = vmatprep.subr.mxu0 %v1476_v0 }
 0x559   :  { %1365 = vmatpush3.msra.mxu0 %v1554_v4 }
 0x55a   :  { %1366 = vmatprep.subr.mxu0 %v1476_v0 }
 0x55b   :  { %1367 = vmatpush3.msra.mxu0 %v1563_v6 }
 0x55c   :  { %1368 = vmatprep.subr.mxu0 %v1476_v0 }
 0x55d   :  { %1369 = vmatpush3.msra.mxu0 %v1573_v8 }
 0x55e   :  { %1384 = vmatprep.subr.mxu0 %v1476_v0 }
 0x616   :  { %v496_v14 = vpop.f32.mrf.mxu0 }
 0x617   :  { %v497_v28 = vadd.f32 %v1610_v11, %v496_v14 }
 0x618   :  { %v1350_v29 = vpop.f32.mrf.mxu0 }
 0x619   :  { %508 = vrot.lane.b32.xlu0 %v497_v28, %s1478_s15  ;;  %v500_v31 = vadd.f32 %v497_v28, %v422_v30 }
 0x61b   :  { %v1223_v32 = vmul.f32 -1.442695, %v500_v31 }
 0x61d   :  { %1436 = vpow2.f32 %v1223_v32  ;;  %529 = vperm.xlu0 %1423, %v527_v36  }
 0x62a   :  { %v1437_v33 = vpop.eup %1436 }
 0x62b   :  { %v504_v34 = vadd.f32 1.0, %v1437_v33 }
 0x62d   :  { %1438 = vrcp.f32 %v504_v34 }
 0x63a   :  { %v1439_v37 = vpop.eup %1438 }
 0x63b   :  { %v518_v43 = vsub.f32 1.0, %v1439_v37  ;;  %v524_v46 = vmul.f32 %v1439_v37, %v1677_v12 }
 0x68b   :  { %v509_v38 = vpop.permute.xlu0 %508 }
 0x68c   :  { %v511_v39 = vmul.f32 %v1439_v37, %v509_v38 }
 0x68e   :  { %513 = vrot.lane.b32.xlu1 %v511_v39, %s1478_s15 }
 0x698   :  { %v530_v44 = vpop.permute.xlu0 %529 }
 0x699   :  { %vm531_vm8 = vcmp.eq.s32.totalorder %v530_v44, 1 }
 0x700   :  { %v514_v40 = vpop.permute.xlu1 %513 }
 0x701   :  { %v516_v41 = vadd.f32 %v514_v40, %v422_v30 }
 0x703   :  { %1440 = vtanh.f32 %v516_v41 }
 0x710   :  { %v1441_v42 = vpop.eup %1440 }
 0x711   :  { %520 = vrot.lane.b32.xlu1 %v1441_v42, %s1480_s16  ;;  %v1230_v42 = vld [vmem:[%s1834_s1 + $0x28] sm:$0xff] }
 0x712   :  { %vm862_vm13 = vcmp.gt.f32.partialorder %v1230_v42, 0.5 }
 0x783   :  { %v521_v45 = vpop.permute.xlu1 %520 }
 0x784   :  { %v523_v47 = vmul.f32 %v521_v45, %v518_v43  ;;  %v758_v45 = vld [vmem:[#allocation2 + $0x28] sm:$0xff] }
 0x786   :  { %v525_v48 = vadd.f32 %v524_v46, %v523_v47 }
 0x788   :  { %v532_v49 = vsel %vm531_vm8, %v525_v48, %v1677_v12 }
 0x789   :  { %538 = vrot.lane.b32.xlu1 %v532_v49, %s1480_s16 }
 0x7fb   :  { %v539_v50 = vpop.permute.xlu1 %538 }
 0x7fc   :  { %1360 = vmatmul.mubr.msk.f32.vlgmr.msra.gmra.mxu1 %vm51_vm1, %v539_v50 }
 0x7fd   :  { %1374 = vmatpush3.msra.mxu1 %v1543_v2  ;;  %1381 = vmatprep.mubr.msk.f32.mxu1 %vm1477_vm0, %v1476_v0 }
 0x7fe   :  { %1375 = vmatprep.subr.mxu1 %v1476_v0 }
 0x7ff   :  { %1376 = vmatpush3.msra.mxu1 %v1554_v4 }
 0x800   :  { %1377 = vmatprep.subr.mxu1 %v1476_v0 }
 0x801   :  { %1378 = vmatpush3.msra.mxu1 %v1563_v6 }
 0x802   :  { %1379 = vmatprep.subr.mxu1 %v1476_v0 }
 0x803   :  { %1380 = vmatpush3.msra.mxu1 %v1573_v8 }
 0x804   :  { %1395 = vmatprep.subr.mxu1 %v1476_v0 }
 0x8bc   :  { %v608_v52 = vpop.f32.mrf.mxu1 }
 0x8bd   :  { %v609_v53 = vadd.f32 %v1610_v11, %v608_v52 }
 0x8be   :  { %v1361_v54 = vpop.f32.mrf.mxu1 }
 0x8bf   :  { %620 = vrot.lane.b32.xlu0 %v609_v53, %s1478_s15  ;;  %v612_v57 = vadd.f32 %v609_v53, %v534_v56 }
 0x8c1   :  { %v1226_v58 = vmul.f32 -1.442695, %v612_v57 }
 0x8c3   :  { %641 = vperm.xlu0 %1423, %v639_v55   ;;  %1442 = vpow2.f32 %v1226_v58 }
 0x8d0   :  { %v1443_v59 = vpop.eup %1442 }
 0x8d1   :  { %v616_v60 = vadd.f32 1.0, %v1443_v59 }
 0x8d3   :  { %1444 = vrcp.f32 %v616_v60 }
 0x8e0   :  { %v1445_v61 = vpop.eup %1444 }
 0x8e1   :  { %v630_v7 = vsub.f32 1.0, %v1445_v61  ;;  %v636_v12 = vmul.f32 %v1445_v61, %v532_v49 }
 0x931   :  { %v621_v62 = vpop.permute.xlu0 %620 }
 0x932   :  { %v623_v63 = vmul.f32 %v1445_v61, %v621_v62  ;;  %v1233_v62 = vld [vmem:[%s1834_s1 + $0x30] sm:$0xff] }
 0x933   :  { %vm974_vm15 = vcmp.gt.f32.partialorder %v1233_v62, 0.5 }
 0x934   :  { %625 = vrot.lane.b32.xlu1 %v623_v63, %s1478_s15 }
 0x93e   :  { %v642_v10 = vpop.permute.xlu0 %641 }
 0x93f   :  { %vm643_vm10 = vcmp.eq.s32.totalorder %v642_v10, 1 }
 0x9a6   :  { %v626_v1 = vpop.permute.xlu1 %625 }
 0x9a7   :  { %v628_v3 = vadd.f32 %v626_v1, %v534_v56 }
 0x9a9   :  { %1446 = vtanh.f32 %v628_v3 }
 0x9b6   :  { %v1447_v5 = vpop.eup %1446 }
 0x9b7   :  { %632 = vrot.lane.b32.xlu1 %v1447_v5, %s1480_s16  ;;  %v975_v5 = vsel %vm974_vm15, 1, %v1479_v26 }
 0xa29   :  { %v633_v9 = vpop.permute.xlu1 %632 }
 0xa2a   :  { %v635_v13 = vmul.f32 %v633_v9, %v630_v7  ;;  %v870_v7 = vld [vmem:[#allocation2 + $0x30] sm:$0xff] }
 0xa2c   :  { %v637_v15 = vadd.f32 %v636_v12, %v635_v13 }
 0xa2e   :  { %v644_v16 = vsel %vm643_vm10, %v637_v15, %v532_v49 }
 0xa2f   :  { %650 = vrot.lane.b32.xlu0 %v644_v16, %s1480_s16 }
 0xaa1   :  { %v651_v17 = vpop.permute.xlu0 %650 }
 0xaa2   :  { %1371 = vmatmul.mubr.msk.f32.vlgmr.msra.gmra.mxu0 %vm51_vm1, %v651_v17 }
 0xaa3   :  { %1385 = vmatpush3.msra.mxu0 %v1543_v2  ;;  %1392 = vmatprep.mubr.msk.f32.mxu0 %vm1477_vm0, %v1476_v0 }
 0xaa4   :  { %1386 = vmatprep.subr.mxu0 %v1476_v0 }
 0xaa5   :  { %1387 = vmatpush3.msra.mxu0 %v1554_v4 }
 0xaa6   :  { %1388 = vmatprep.subr.mxu0 %v1476_v0 }
 0xaa7   :  { %1389 = vmatpush3.msra.mxu0 %v1563_v6 }
 0xaa8   :  { %1390 = vmatprep.subr.mxu0 %v1476_v0 }
 0xaa9   :  { %1391 = vmatpush3.msra.mxu0 %v1573_v8 }
 0xaaa   :  { %1406 = vmatprep.subr.mxu0 %v1476_v0 }
 0xb62   :  { %v720_v19 = vpop.f32.mrf.mxu0 }
 0xb63   :  { %v721_v20 = vadd.f32 %v1610_v11, %v720_v19 }
 0xb64   :  { %v1372_v21 = vpop.f32.mrf.mxu0 }
 0xb65   :  { %732 = vrot.lane.b32.xlu1 %v721_v20, %s1478_s15  ;;  %v724_v24 = vadd.f32 %v721_v20, %v646_v23 }
 0xb67   :  { %v1229_v25 = vmul.f32 -1.442695, %v724_v24 }
 0xb69   :  { %753 = vperm.xlu1 %1422, %v751_v22   ;;  %1448 = vpow2.f32 %v1229_v25 }
 0xb76   :  { %v1449_v27 = vpop.eup %1448 }
 0xb77   :  { %v728_v14 = vadd.f32 1.0, %v1449_v27 }
 0xb79   :  { %1450 = vrcp.f32 %v728_v14 }
 0xb86   :  { %v1451_v28 = vpop.eup %1450 }
 0xb87   :  { %v742_v34 = vsub.f32 1.0, %v1451_v28  ;;  %v748_v37 = vmul.f32 %v1451_v28, %v644_v16 }
 0xbd7   :  { %v733_v29 = vpop.permute.xlu1 %732 }
 0xbd8   :  { %v735_v30 = vmul.f32 %v1451_v28, %v733_v29  ;;  %v1236_v29 = vld [vmem:[%s1834_s1 + $0x38] sm:$0xff] }
 0xbd9   :  { %vm1086_vm2 = vcmp.gt.f32.partialorder %v1236_v29, 0.5 }
 0xbda   :  { %737 = vrot.lane.b32.xlu0 %v735_v30, %s1478_s15 }
 0xbe4   :  { %v754_v36 = vpop.permute.xlu1 %753 }
 0xbe5   :  { %vm755_vm12 = vcmp.eq.s32.totalorder %v754_v36, 1 }
 0xc4c   :  { %v738_v31 = vpop.permute.xlu0 %737 }
 0xc4d   :  { %v740_v32 = vadd.f32 %v738_v31, %v646_v23 }
 0xc4f   :  { %1452 = vtanh.f32 %v740_v32 }
 0xc5c   :  { %v1453_v33 = vpop.eup %1452 }
 0xc5d   :  { %744 = vrot.lane.b32.xlu0 %v1453_v33, %s1480_s16  ;;  %v1087_v33 = vsel %vm1086_vm2, 1, %v1479_v26 }
 0xccf   :  { %v745_v35 = vpop.permute.xlu0 %744 }
 0xcd0   :  { %v747_v38 = vmul.f32 %v745_v35, %v742_v34  ;;  %v982_v34 = vld [vmem:[#allocation2 + $0x38] sm:$0xff] }
 0xcd2   :  { %v749_v39 = vadd.f32 %v748_v37, %v747_v38 }
 0xcd4   :  { %v756_v40 = vsel %vm755_vm12, %v749_v39, %v644_v16 }
 0xcd5   :  { %762 = vrot.lane.b32.xlu1 %v756_v40, %s1480_s16 }
 0xd47   :  { %v763_v41 = vpop.permute.xlu1 %762 }
 0xd48   :  { %1382 = vmatmul.mubr.msk.f32.vlgmr.msra.gmra.mxu1 %vm51_vm1, %v763_v41 }
 0xd49   :  { %1396 = vmatpush3.msra.mxu1 %v1543_v2  ;;  %1403 = vmatprep.mubr.msk.f32.mxu1 %vm1477_vm0, %v1476_v0 }
 0xd4a   :  { %1397 = vmatprep.subr.mxu1 %v1476_v0 }
 0xd4b   :  { %1398 = vmatpush3.msra.mxu1 %v1554_v4  ;;  %v863_v4 = vsel %vm862_vm13, 1, %v1479_v26  ;;  %v1096_v26 = vld [vmem:[%s1835_s6 + $0x18] sm:$0xff] }
 0xd4c   :  { %1399 = vmatprep.subr.mxu1 %v1476_v0 }
 0xd4d   :  { %1400 = vmatpush3.msra.mxu1 %v1563_v6 }
 0xd4e   :  { %1401 = vmatprep.subr.mxu1 %v1476_v0 }
 0xd4f   :  { %1402 = vmatpush3.msra.mxu1 %v1573_v8 }
 0xe08   :  { %v832_v2 = vpop.f32.mrf.mxu1 }
 0xe09   :  { %v833_v43 = vadd.f32 %v1610_v11, %v832_v2  ;;  %v1095_v2 = vld [vmem:[%s1835_s6 + $0x10] sm:$0xff] }
 0xe0a   :  { %v1383_v44 = vpop.f32.mrf.mxu1 }
 0xe0b   :  { %844 = vrot.lane.b32.xlu0 %v833_v43, %s1478_s15  ;;  %v836_v6 = vadd.f32 %v833_v43, %v758_v45  ;;  %v1094_v43 = vld [vmem:[%s1835_s6 + $0x8] sm:$0xff]  ;;  %v1093_v44 = vld [vmem:[%s1835_s6] sm:$0xff] }
 0xe0d   :  { %v1232_v46 = vmul.f32 -1.442695, %v836_v6 }
 0xe0f   :  { %865 = vperm.xlu0 %1423, %v863_v4   ;;  %1454 = vpow2.f32 %v1232_v46 }
 0xe1c   :  { %v1455_v47 = vpop.eup %1454 }
 0xe1d   :  { %v840_v8 = vadd.f32 1.0, %v1455_v47 }
 0xe1f   :  { %1456 = vrcp.f32 %v840_v8 }
 0xe2c   :  { %v1457_v48 = vpop.eup %1456 }
 0xe2d   :  { %v854_v54 = vsub.f32 1.0, %v1457_v48  ;;  %v860_v57 = vmul.f32 %v1457_v48, %v756_v40 }
 0xe7d   :  { %v845_v49 = vpop.permute.xlu0 %844 }
 0xe7e   :  { %v847_v50 = vmul.f32 %v1457_v48, %v845_v49 }
 0xe80   :  { %849 = vrot.lane.b32.xlu1 %v847_v50, %s1478_s15 }
 0xe8a   :  { %v866_v56 = vpop.permute.xlu0 %865 }
 0xe8b   :  { %vm867_vm14 = vcmp.eq.s32.totalorder %v866_v56, 1 }
 0xef2   :  { %v850_v51 = vpop.permute.xlu1 %849 }
 0xef3   :  { %v852_v52 = vadd.f32 %v850_v51, %v758_v45 }
 0xef5   :  { %1458 = vtanh.f32 %v852_v52 }
 0xf02   :  { %v1459_v53 = vpop.eup %1458 }
 0xf03   :  { %856 = vrot.lane.b32.xlu1 %v1459_v53, %s1480_s16 }
 0xf75   :  { %v857_v55 = vpop.permute.xlu1 %856 }
 0xf76   :  { %v859_v58 = vmul.f32 %v857_v55, %v854_v54 }
 0xf78   :  { %v861_v59 = vadd.f32 %v860_v57, %v859_v58 }
 0xf7a   :  { %v868_v60 = vsel %vm867_vm14, %v861_v59, %v756_v40 }
 0xf7b   :  { %874 = vrot.lane.b32.xlu0 %v868_v60, %s1480_s16 }
 0xfed   :  { %v875_v61 = vpop.permute.xlu0 %874 }
 0xfee   :  { %1393 = vmatmul.mubr.msk.f32.vlgmr.msra.gmra.mxu0 %vm51_vm1, %v875_v61 }
 0xfef   :  { %1414 = vmatprep.mubr.msk.f32.mxu0 %vm1477_vm0, %v1476_v0  ;;  %1407 = vmatpush3.msra.mxu0 %v1096_v26 }
 0xff0   :  { %1408 = vmatprep.subr.mxu0 %v1476_v0 }
 0xff1   :  { %1409 = vmatpush3.msra.mxu0 %v1095_v2 }
 0xff2   :  { %1410 = vmatprep.subr.mxu0 %v1476_v0 }
 0xff3   :  { %1411 = vmatpush3.msra.mxu0 %v1094_v43 }
 0xff4   :  { %1412 = vmatprep.subr.mxu0 %v1476_v0  ;;  %v1239_v0 = vld [vmem:[%s1837_s7] ss:$0 sm:$0xff] }
 0xff5   :  { %1413 = vmatpush3.msra.mxu0 %v1093_v44 }
0x10ae   :  { %v944_v63 = vpop.f32.mrf.mxu0 }
0x10af   :  { %v945_v1 = vadd.f32 %v1610_v11, %v944_v63 }
0x10b0   :  { %v1394_v3 = vpop.f32.mrf.mxu0 }
0x10b1   :  { %956 = vrot.lane.b32.xlu1 %v945_v1, %s1478_s15  ;;  %v948_v9 = vadd.f32 %v945_v1, %v870_v7 }
0x10b3   :  { %v1235_v10 = vmul.f32 -1.442695, %v948_v9 }
0x10b5   :  { %977 = vperm.xlu1 %1422, %v975_v5   ;;  %1460 = vpow2.f32 %v1235_v10 }
0x10c2   :  { %v1461_v12 = vpop.eup %1460 }
0x10c3   :  { %v952_v13 = vadd.f32 1.0, %v1461_v12 }
0x10c5   :  { %1462 = vrcp.f32 %v952_v13 }
0x10d2   :  { %v1463_v15 = vpop.eup %1462 }
0x10d3   :  { %v966_v21 = vsub.f32 1.0, %v1463_v15  ;;  %v972_v24 = vmul.f32 %v1463_v15, %v868_v60 }
0x1123   :  { %v957_v16 = vpop.permute.xlu1 %956 }
0x1124   :  { %v959_v17 = vmul.f32 %v1463_v15, %v957_v16 }
0x1126   :  { %961 = vrot.lane.b32.xlu0 %v959_v17, %s1478_s15 }
0x1130   :  { %v978_v23 = vpop.permute.xlu1 %977 }
0x1131   :  { %vm979_vm0 = vcmp.eq.s32.totalorder %v978_v23, 1 }
0x1198   :  { %v962_v18 = vpop.permute.xlu0 %961 }
0x1199   :  { %v964_v19 = vadd.f32 %v962_v18, %v870_v7 }
0x119b   :  { %1464 = vtanh.f32 %v964_v19 }
0x11a8   :  { %v1465_v20 = vpop.eup %1464 }
0x11a9   :  { %968 = vrot.lane.b32.xlu0 %v1465_v20, %s1480_s16 }
0x121b   :  { %v969_v22 = vpop.permute.xlu0 %968 }
0x121c   :  { %v971_v25 = vmul.f32 %v969_v22, %v966_v21 }
0x121e   :  { %v973_v27 = vadd.f32 %v972_v24, %v971_v25 }
0x1220   :  { %v980_v14 = vsel %vm979_vm0, %v973_v27, %v868_v60 }
0x1221   :  { %986 = vrot.lane.b32.xlu1 %v980_v14, %s1480_s16 }
0x1293   :  { %v987_v28 = vpop.permute.xlu1 %986 }
0x1294   :  { %1404 = vmatmul.mubr.msk.f32.vlgmr.msra.gmra.mxu1 %vm51_vm1, %v987_v28 }
0x1354   :  { %v1056_v30 = vpop.f32.mrf.mxu1 }
0x1355   :  { %v1057_v31 = vadd.f32 %v1610_v11, %v1056_v30 }
0x1356   :  { %v1405_v32 = vpop.f32.mrf.mxu1 }
0x1357   :  { %1068 = vrot.lane.b32.xlu0 %v1057_v31, %s1478_s15  ;;  %v1060_v35 = vadd.f32 %v1057_v31, %v982_v34 }
0x1359   :  { %v1238_v36 = vmul.f32 -1.442695, %v1060_v35 }
0x135b   :  { %1089 = vperm.xlu0 %1423, %v1087_v33   ;;  %1466 = vpow2.f32 %v1238_v36 }
0x1368   :  { %v1467_v37 = vpop.eup %1466 }
0x1369   :  { %v1064_v38 = vadd.f32 1.0, %v1467_v37 }
0x136b   :  { %1468 = vrcp.f32 %v1064_v38 }
0x1378   :  { %v1469_v39 = vpop.eup %1468 }
0x1379   :  { %v1078_v45 = vsub.f32 1.0, %v1469_v39  ;;  %v1084_v47 = vmul.f32 %v1469_v39, %v980_v14 }
0x13c9   :  { %v1069_v40 = vpop.permute.xlu0 %1068 }
0x13ca   :  { %v1071_v41 = vmul.f32 %v1469_v39, %v1069_v40 }
0x13cc   :  { %1073 = vrot.lane.b32.xlu1 %v1071_v41, %s1478_s15 }
0x13d6   :  { %v1090_v46 = vpop.permute.xlu0 %1089 }
0x13d7   :  { %vm1091_vm3 = vcmp.eq.s32.totalorder %v1090_v46, 1 }
0x143e   :  { %v1074_v11 = vpop.permute.xlu1 %1073 }
0x143f   :  { %v1076_v42 = vadd.f32 %v1074_v11, %v982_v34 }
0x1441   :  { %1470 = vtanh.f32 %v1076_v42 }
0x144e   :  { %v1471_v4 = vpop.eup %1470 }
0x144f   :  { %1080 = vrot.lane.b32.xlu1 %v1471_v4, %s1480_s16 }
0x14c1   :  { %v1081_v6 = vpop.permute.xlu1 %1080 }
0x14c2   :  { %v1083_v8 = vmul.f32 %v1081_v6, %v1078_v45 }
0x14c4   :  { %v1085_v48 = vadd.f32 %v1084_v47, %v1083_v8 }
0x14c6   :  { %v1092_v49 = vsel %vm1091_vm3, %v1085_v48, %v980_v14 }
0x14c7   :  { %1105 = vrot.lane.b32.xlu0 %v1092_v49, %s1480_s16 }
0x1539   :  { %v1106_v50 = vpop.permute.xlu0 %1105 }
0x153a   :  { %1193 = vst.msk [vmem:[%s1836_s9] sm:$0xff] %vm51_vm1, %v1106_v50  ;;  %1415 = vmatmul.mubr.msk.f32.vlgmr.msra.gmra.mxu0 %vm51_vm1, %v1106_v50 }
0x15fa   :  { %v1175_v51 = vpop.f32.mrf.mxu0 }
0x15fb   :  { %v1176_v52 = vadd.f32 %v1239_v0, %v1175_v51 }
0x15fc   :  { %v1416_v53 = vpop.f32.mrf.mxu0 }
0x15fd   :  { %v1180_v54 = vsel %vm1179_vm4, %v1176_v52, -inf  ;;  %1194 = vst.msk [vmem:[%s1838_s10] sm:$0xff] %vm1179_vm4, %v1176_v52 }
0x15fe   :  { %1181 = vmax.xlane.f32.xlu1 %v1180_v54 }
0x1687   :  { %v1182_v55 = vpop.xlane.xlu1 %1181 }
0x1688   :  { %v1183_v56 = vsub.f32 %v1176_v52, %v1182_v55 }
0x168a   :  { %v1184_v57 = vmul.f32 1.442695, %v1183_v56 }
0x168c   :  { %1472 = vpow2.f32 %v1184_v57 }
0x1699   :  { %v1473_v58 = vpop.eup %1472 }
0x169a   :  { %v1186_v59 = vsel %vm1179_vm4, %v1473_v58, 0.0 }
0x169b   :  { %1187 = vadd.xlane.f32.xlu0 %v1186_v59 }
0x1724   :  { %v1188_v60 = vpop.xlane.xlu0 %1187 }
0x1725   :  { %1474 = vrcp.f32 %v1188_v60 }
0x1732   :  { %v1475_v61 = vpop.eup %1474 }
0x1733   :  { %v1190_v62 = vmul.f32 %v1475_v61, %v1473_v58 }
0x1735   :  { %1191 = vst.msk [vmem:[%s1839_s8] sm:$0xff] %vm1179_vm4, %v1190_v62 }

</bundles_post_ra>
